<compile_context>
chip_gen: v7x
topology: tpu7x:2x2x1
jax: 0.10.0
libtpu: 0.0.40
codegen_flags: <defaults>
</compile_context>

<pallas_src>
import numpy as np
import jax
import jax.numpy as jnp
from jax import lax
from jax.experimental import pallas as pl
from jax.experimental.pallas import tpu as pltpu

PRIMITIVES = ("none", "skip_connect", "avg_pool_3x3", "max_pool_3x3",
              "nor_conv_1x1", "nor_conv_3x3")

# BatchNorm2d(affine=False) in eval mode with default running stats (mean=0, var=1)
# reduces to a constant scale.
# TODO(synk): training-mode BN (batch statistics / running-stat updates) is not modeled.
BN_EPS = 1e-5
BN_SCALE = 1.0 / (1.0 + BN_EPS) ** 0.5
# -inf stand-in for the max-pool halo.  Safe because every 3x3 window is centred on an
# in-bounds pixel (so the max is always >= an interior value); it would only leak if real
# inputs could be <= -3e38.
NEG = -3.0e38


def mixed_op_pallas(x_nchw, weights, w1, w3):
    """MixedOp.forward(x, weights, op_name=None) -- weighted-sum branch, stride=1 only."""
    B, C, H, W = x_nchw.shape
    Hp, Wp = H + 2, W + 2

    # ---- pack G images into the channel axis so the lane dim is 128-wide ----
    G = max(1, 128 // (W * C))            # images per "group" (2 for C=4, W=16)
    Cg = G * C                            # packed channel count (8)
    GWC = W * Cg                          # lane width of one group slab (128)
    GC = Cg                               # one spatial column of packed channels
    GWpC = Wp * Cg                        # padded lane width (144)

    ngroups = -(-B // G)                  # ceil(B / G)
    Bp = ngroups * G
    xg = x_nchw.astype(jnp.float32)
    if Bp != B:
        xg = jnp.pad(xg, ((0, Bp - B), (0, 0), (0, 0), (0, 0)))   # zero images, dropped at end
    # (ngroups, G, C, H, W) -> (ngroups, H, W, G, C) -> (ngroups, H, W*G*C) lane-dense slab
    x2d = xg.reshape(ngroups, G, C, H, W).transpose(0, 3, 4, 1, 2).reshape(ngroups, H, GWC)

    # ---- fold alphas / BN into the conv weights (wrapper-side, once per call) ----
    wts = weights.astype(jnp.float32)
    a_skip, a_avg, a_max, a_c1, a_c3 = wts[1], wts[2], wts[3], wts[4], wts[5]
    # weights[0] multiplies the Zero op -> contributes exactly 0, skipped.
    w3_s = (a_c3 * BN_SCALE) * w3.astype(jnp.float32)                   # (9, C, C)
    w3_s = w3_s.at[4].add((a_c1 * BN_SCALE) * w1.astype(jnp.float32))   # 1x1 merged into centre tap

    # Per-tap weight for the G-packed channel layout: block-diagonal over the
    # image-in-group index (no cross-image mixing).
    eye_g = jnp.eye(G, dtype=jnp.float32)
    wtap = jnp.einsum("gh,tij->tgihj", eye_g, w3_s).reshape(9, Cg, Cg)  # (9, Cg, Cg)

    # Banded block-Toeplitz weights: the 3x3 (+merged 1x1) conv becomes 3 matmuls in the
    # (rows, W*Cg) layout:  band[dy][(w+dx)*Cg + ci, w*Cg + co] = wtap[dy*3+dx, ci, co]
    eye_w = jnp.eye(W, dtype=jnp.float32)
    bands = []
    for dy in range(3):
        acc = jnp.zeros((GWpC, GWC), jnp.float32)
        for dx in range(3):
            blk = jnp.kron(eye_w, wtap[dy * 3 + dx])                    # (W*Cg, W*Cg) block-diag
            acc = acc + jnp.pad(blk, ((dx * Cg, (2 - dx) * Cg), (0, 0)))  # shift rows by dx*Cg
        bands.append(acc)
    wband = jnp.stack(bands)                                            # (3, Wp*Cg, W*Cg)

    # avg-pool: alpha * 1/valid-count map (count_include_pad=False), host-side constant.
    hy = np.arange(H)
    wx = np.arange(W)
    cnt = np.zeros((H, W), np.float32)
    for dy in range(3):
        for dx in range(3):
            vy = (((hy + dy - 1) >= 0) & ((hy + dy - 1) < H)).astype(np.float32)
            vx = (((wx + dx - 1) >= 0) & ((wx + dx - 1) < W)).astype(np.float32)
            cnt += vy[:, None] * vx[None, :]
    inv_cnt = a_avg * jnp.asarray(np.repeat(1.0 / cnt, Cg, axis=1))     # (H, W*Cg)

    scalars = jnp.stack([a_skip, a_max])                                # SMEM scalars

    def kernel(alpha_ref, x_ref, wband_ref, invc_ref, o_ref, xp0, xpn):
        # One-time halo init (VMEM scratch persists across grid steps; the grid axis is
        # "arbitrary" == sequential, so step 0 always runs first).
        @pl.when(pl.program_id(0) == 0)
        def _init():
            xp0[...] = jnp.zeros((Hp, GWpC), jnp.float32)
            xpn[...] = jnp.full((Hp, GWpC), NEG, jnp.float32)

        x = x_ref[0]                                    # (H, GWC) lane-dense, G images packed

        # Per step only the interior is rewritten; the halo stays neutral from the init.
        xp0[pl.ds(1, H), pl.ds(GC, GWC)] = x            # zero-halo slab (sum / conv)
        xpn[pl.ds(1, H), pl.ds(GC, GWC)] = x            # -inf-halo slab (max)

        xz = xp0[...]                                   # (Hp, GWpC)
        xn = xpn[...]
        r = jnp.maximum(xz, 0.0)                        # ReLU; relu(0)=0 keeps the halo neutral

        # Separable 3x3 pooling: dy reduction (sublane shifts) then dx reduction (lane shifts).
        sum_y = xz[0:H, :] + xz[1:1 + H, :] + xz[2:2 + H, :]                       # (H, GWpC)
        max_y = jnp.maximum(jnp.maximum(xn[0:H, :], xn[1:1 + H, :]), xn[2:2 + H, :])
        sum3 = sum_y[:, 0:GWC] + sum_y[:, GC:GC + GWC] + sum_y[:, 2 * GC:2 * GC + GWC]
        mx = jnp.maximum(jnp.maximum(max_y[:, 0:GWC], max_y[:, GC:GC + GWC]),
                         max_y[:, 2 * GC:2 * GC + GWC])

        # Both convs (3x3 + merged 1x1), alphas & BN pre-folded: 3 banded matmuls with
        # chained '+' accumulation; the result lands directly in the lane-dense layout.
        conv = jnp.dot(r[0:H, :], wband_ref[0], preferred_element_type=jnp.float32)
        conv = conv + jnp.dot(r[1:1 + H, :], wband_ref[1], preferred_element_type=jnp.float32)
        conv = conv + jnp.dot(r[2:2 + H, :], wband_ref[2], preferred_element_type=jnp.float32)

        out = alpha_ref[0] * x + invc_ref[...] * sum3 + alpha_ref[1] * mx + conv
        o_ref[0] = out.astype(o_ref.dtype)              # single full-width (H, 128) store

    out2d = pl.pallas_call(
        kernel,
        out_shape=jax.ShapeDtypeStruct((ngroups, H, GWC), jnp.float32),
        grid=(ngroups,),
        in_specs=[
            pl.BlockSpec(memory_space=pltpu.MemorySpace.SMEM),   # [a_skip, a_max]
            pl.BlockSpec((1, H, GWC), lambda g: (g, 0, 0)),      # one G-image group, 128 lanes
            pl.BlockSpec((3, GWpC, GWC), lambda g: (0, 0, 0)),   # fused banded conv weights
            pl.BlockSpec((H, GWC), lambda g: (0, 0)),            # a_avg * 1/valid-count map
        ],
        out_specs=pl.BlockSpec((1, H, GWC), lambda g: (g, 0, 0)),
        scratch_shapes=[pltpu.VMEM((Hp, GWpC), jnp.float32),     # zero-halo slab
                        pltpu.VMEM((Hp, GWpC), jnp.float32)],    # -inf-halo slab
        # "arbitrary": the one-time halo init requires sequential grid visits.  On v7x with
        # many groups, switch to per-step border init + pltpu.CORE_PARALLEL so the group
        # axis shards across both TensorCores.
        compiler_params=pltpu.CompilerParams(dimension_semantics=("arbitrary",)),
    )(scalars, x2d, wband, inv_cnt)

    out = out2d.reshape(ngroups, H, W, G, C).transpose(0, 3, 4, 1, 2).reshape(Bp, C, H, W)
    return out[:B]


def mixed_op_ref(x, weights, w1, w3):
    """Pure-JAX NCHW reference mirroring the PyTorch ops (for verification)."""
    pad = ((0, 0), (0, 0), (1, 1), (1, 1))
    sums = lax.reduce_window(x, 0.0, lax.add, (1, 1, 3, 3), (1, 1, 1, 1), pad)
    cnts = lax.reduce_window(jnp.ones_like(x), 0.0, lax.add, (1, 1, 3, 3), (1, 1, 1, 1), pad)
    avg = sums / cnts                                   # AvgPool2d(3,1,1, count_include_pad=False)
    mx = lax.reduce_window(x, -jnp.inf, lax.max, (1, 1, 3, 3), (1, 1, 1, 1), pad)
    rx = jnp.maximum(x, 0.0)
    k1 = jnp.transpose(w1)[:, :, None, None]            # (cout, cin, 1, 1)
    k3 = jnp.transpose(w3.reshape(3, 3, w3.shape[1], w3.shape[2]), (3, 2, 0, 1))  # (cout,cin,3,3)
    dn = ("NCHW", "OIHW", "NCHW")
    c1 = lax.conv_general_dilated(rx, k1, (1, 1), "SAME", dimension_numbers=dn) * BN_SCALE
    c3 = lax.conv_general_dilated(rx, k3, (1, 1), "SAME", dimension_numbers=dn) * BN_SCALE
    ops = [jnp.zeros_like(x), x, avg, mx, c1, c3]
    return sum(w * o for w, o in zip(weights, ops))


if __name__ == "__main__":
    key = jax.random.PRNGKey(0)
    kx, ka, k1, k3 = jax.random.split(key, 4)

    B, C, H, W = 2, 4, 16, 16
    x = jax.random.normal(kx, (B, C, H, W), jnp.float32)

    # Architecture weights (as DARTS does: softmax over alphas), one per primitive.
    alphas = jax.random.normal(ka, (len(PRIMITIVES),), jnp.float32)
    weights = jax.nn.softmax(alphas)

    # Deterministic conv parameters (Conv2d, bias=False):
    #   nor_conv_1x1: weight stored as (cin, cout)
    #   nor_conv_3x3: weight stored as (ky*3+kx, cin, cout)
    w1 = jax.random.normal(k1, (C, C), jnp.float32) * (1.0 / C) ** 0.5
    w3 = jax.random.normal(k3, (9, C, C), jnp.float32) * (1.0 / (C * 9)) ** 0.5

    out = mixed_op_pallas(x, weights, w1, w3)
    out = jax.block_until_ready(out)

    ref = mixed_op_ref(x, weights, w1, w3)
    assert out.shape == (B, C, H, W)
    err = float(jnp.max(jnp.abs(out - ref)))
    assert jnp.allclose(out, ref, atol=1e-4, rtol=1e-4), err

    print("KERNEL_OK")
</pallas_src>

<mosaic_0001>
module attributes {stable_mosaic.version = 11 : i64} {
  func.func @kernel(%arg0: i32, %arg1: memref<2xf32, #tpu.memory_space<smem>>, %arg2: memref<1x16x128xf32, #tpu.memory_space<vmem>>, %arg3: memref<3x144x128xf32, #tpu.memory_space<vmem>>, %arg4: memref<16x128xf32, #tpu.memory_space<vmem>>, %arg5: memref<1x16x128xf32, #tpu.memory_space<vmem>>, %arg6: memref<18x144xf32, #tpu.memory_space<vmem>>, %arg7: memref<18x144xf32, #tpu.memory_space<vmem>>) attributes {dimension_semantics = [#tpu.dimension_semantics<arbitrary>], iteration_bounds = array<i64: 1>, scalar_prefetch = 0 : i64, scratch_operands = 2 : i64, tpu.core_type = #tpu.core_type<tc>, window_params = [{transform_indices = @transform_0, window_bounds = array<i64: 2>}, {transform_indices = @transform_1, window_bounds = array<i64: 1, 16, 128>}, {pipeline_mode = #tpu.pipeline_mode<synchronous>, transform_indices = @transform_2, window_bounds = array<i64: 3, 144, 128>}, {pipeline_mode = #tpu.pipeline_mode<synchronous>, transform_indices = @transform_3, window_bounds = array<i64: 16, 128>}, {transform_indices = @transform_4, window_bounds = array<i64: 1, 16, 128>}]} {
    %c0_i32 = arith.constant 0 : i32
    %0 = arith.cmpi eq, %arg0, %c0_i32 : i32
    %1 = arith.extui %0 : i1 to i32
    %c0_i32_0 = arith.constant 0 : i32
    %2 = arith.cmpi ne, %1, %c0_i32_0 : i32
    scf.if %2 {
      %cst_27 = arith.constant 0.000000e+00 : f32
      %59 = vector.broadcast %cst_27 : f32 to vector<18x144xf32>
      %c0_28 = arith.constant 0 : index
      %c0_29 = arith.constant 0 : index
      %60 = vector.load %arg6[%c0_28, %c0_29] : memref<18x144xf32, #tpu.memory_space<vmem>>, vector<18x144xf32>
      tpu.vector_store %arg6[%c0_28, %c0_29], %59 {strides = array<i32>} : memref<18x144xf32, #tpu.memory_space<vmem>>, vector<18x144xf32>,
      %cst_30 = arith.constant -3.000000e+38 : f32
      %61 = vector.broadcast %cst_30 : f32 to vector<18x144xf32>
      %c0_31 = arith.constant 0 : index
      %c0_32 = arith.constant 0 : index
      %62 = vector.load %arg7[%c0_31, %c0_32] : memref<18x144xf32, #tpu.memory_space<vmem>>, vector<18x144xf32>
      tpu.vector_store %arg7[%c0_31, %c0_32], %61 {strides = array<i32>} : memref<18x144xf32, #tpu.memory_space<vmem>>, vector<18x144xf32>,
    } else {
    }
    %c0 = arith.constant 0 : index
    %c0_1 = arith.constant 0 : index
    %c0_2 = arith.constant 0 : index
    %3 = vector.load %arg2[%c0, %c0_1, %c0_2] : memref<1x16x128xf32, #tpu.memory_space<vmem>>, vector<1x16x128xf32>
    %4 = vector.shape_cast %3 : vector<1x16x128xf32> to vector<16x128xf32>
    %c1 = arith.constant 1 : index
    %c8 = arith.constant 8 : index
    %5 = vector.load %arg6[%c1, %c8] : memref<18x144xf32, #tpu.memory_space<vmem>>, vector<16x128xf32>
    tpu.vector_store %arg6[%c1, %c8], %4 {strides = array<i32>} : memref<18x144xf32, #tpu.memory_space<vmem>>, vector<16x128xf32>,
    %c1_3 = arith.constant 1 : index
    %c8_4 = arith.constant 8 : index
    %6 = vector.load %arg7[%c1_3, %c8_4] : memref<18x144xf32, #tpu.memory_space<vmem>>, vector<16x128xf32>
    tpu.vector_store %arg7[%c1_3, %c8_4], %4 {strides = array<i32>} : memref<18x144xf32, #tpu.memory_space<vmem>>, vector<16x128xf32>,
    %c0_5 = arith.constant 0 : index
    %c0_6 = arith.constant 0 : index
    %7 = vector.load %arg6[%c0_5, %c0_6] : memref<18x144xf32, #tpu.memory_space<vmem>>, vector<18x144xf32>
    %c0_7 = arith.constant 0 : index
    %c0_8 = arith.constant 0 : index
    %8 = vector.load %arg7[%c0_7, %c0_8] : memref<18x144xf32, #tpu.memory_space<vmem>>, vector<18x144xf32>
    %cst = arith.constant 0.000000e+00 : f32
    %9 = vector.broadcast %cst : f32 to vector<18x144xf32>
    %10 = arith.maximumf %7, %9 : vector<18x144xf32>
    %11 = vector.extract_strided_slice %7 {offsets = [0, 0], sizes = [16, 144], strides = [1, 1]} : vector<18x144xf32> to vector<16x144xf32>
    %12 = vector.extract_strided_slice %7 {offsets = [1, 0], sizes = [16, 144], strides = [1, 1]} : vector<18x144xf32> to vector<16x144xf32>
    %13 = arith.addf %11, %12 : vector<16x144xf32>
    %14 = vector.extract_strided_slice %7 {offsets = [2, 0], sizes = [16, 144], strides = [1, 1]} : vector<18x144xf32> to vector<16x144xf32>
    %15 = arith.addf %13, %14 : vector<16x144xf32>
    %16 = vector.extract_strided_slice %8 {offsets = [0, 0], sizes = [16, 144], strides = [1, 1]} : vector<18x144xf32> to vector<16x144xf32>
    %17 = vector.extract_strided_slice %8 {offsets = [1, 0], sizes = [16, 144], strides = [1, 1]} : vector<18x144xf32> to vector<16x144xf32>
    %18 = arith.maximumf %16, %17 : vector<16x144xf32>
    %19 = vector.extract_strided_slice %8 {offsets = [2, 0], sizes = [16, 144], strides = [1, 1]} : vector<18x144xf32> to vector<16x144xf32>
    %20 = arith.maximumf %18, %19 : vector<16x144xf32>
    %21 = vector.extract_strided_slice %15 {offsets = [0, 0], sizes = [16, 128], strides = [1, 1]} : vector<16x144xf32> to vector<16x128xf32>
    %22 = vector.extract_strided_slice %15 {offsets = [0, 8], sizes = [16, 128], strides = [1, 1]} : vector<16x144xf32> to vector<16x128xf32>
    %23 = arith.addf %21, %22 : vector<16x128xf32>
    %24 = vector.extract_strided_slice %15 {offsets = [0, 16], sizes = [16, 128], strides = [1, 1]} : vector<16x144xf32> to vector<16x128xf32>
    %25 = arith.addf %23, %24 : vector<16x128xf32>
    %26 = vector.extract_strided_slice %20 {offsets = [0, 0], sizes = [16, 128], strides = [1, 1]} : vector<16x144xf32> to vector<16x128xf32>
    %27 = vector.extract_strided_slice %20 {offsets = [0, 8], sizes = [16, 128], strides = [1, 1]} : vector<16x144xf32> to vector<16x128xf32>
    %28 = arith.maximumf %26, %27 : vector<16x128xf32>
    %29 = vector.extract_strided_slice %20 {offsets = [0, 16], sizes = [16, 128], strides = [1, 1]} : vector<16x144xf32> to vector<16x128xf32>
    %30 = arith.maximumf %28, %29 : vector<16x128xf32>
    %31 = vector.extract_strided_slice %10 {offsets = [0, 0], sizes = [16, 144], strides = [1, 1]} : vector<18x144xf32> to vector<16x144xf32>
    %c0_9 = arith.constant 0 : index
    %c0_10 = arith.constant 0 : index
    %c0_11 = arith.constant 0 : index
    %32 = vector.load %arg3[%c0_9, %c0_10, %c0_11] : memref<3x144x128xf32, #tpu.memory_space<vmem>>, vector<1x144x128xf32>
    %33 = vector.shape_cast %32 : vector<1x144x128xf32> to vector<144x128xf32>
    %cst_12 = arith.constant dense<0.000000e+00> : vector<16x128xf32>
    %34 = tpu.matmul %31, %33, %cst_12 {dimension_numbers = #tpu.dot_dimension_numbers<[1], [0], [0], [1], [0, 0, 1, 1], [], []>} : vector<16x144xf32>, vector<144x128xf32>, vector<16x128xf32> -> vector<16x128xf32>
    %35 = vector.extract_strided_slice %10 {offsets = [1, 0], sizes = [16, 144], strides = [1, 1]} : vector<18x144xf32> to vector<16x144xf32>
    %c1_13 = arith.constant 1 : index
    %c0_14 = arith.constant 0 : index
    %c0_15 = arith.constant 0 : index
    %36 = vector.load %arg3[%c1_13, %c0_14, %c0_15] : memref<3x144x128xf32, #tpu.memory_space<vmem>>, vector<1x144x128xf32>
    %37 = vector.shape_cast %36 : vector<1x144x128xf32> to vector<144x128xf32>
    %cst_16 = arith.constant dense<0.000000e+00> : vector<16x128xf32>
    %38 = tpu.matmul %35, %37, %cst_16 {dimension_numbers = #tpu.dot_dimension_numbers<[1], [0], [0], [1], [0, 0, 1, 1], [], []>} : vector<16x144xf32>, vector<144x128xf32>, vector<16x128xf32> -> vector<16x128xf32>
    %39 = arith.addf %34, %38 : vector<16x128xf32>
    %40 = vector.extract_strided_slice %10 {offsets = [2, 0], sizes = [16, 144], strides = [1, 1]} : vector<18x144xf32> to vector<16x144xf32>
    %c2 = arith.constant 2 : index
    %c0_17 = arith.constant 0 : index
    %c0_18 = arith.constant 0 : index
    %41 = vector.load %arg3[%c2, %c0_17, %c0_18] : memref<3x144x128xf32, #tpu.memory_space<vmem>>, vector<1x144x128xf32>
    %42 = vector.shape_cast %41 : vector<1x144x128xf32> to vector<144x128xf32>
    %cst_19 = arith.constant dense<0.000000e+00> : vector<16x128xf32>
    %43 = tpu.matmul %40, %42, %cst_19 {dimension_numbers = #tpu.dot_dimension_numbers<[1], [0], [0], [1], [0, 0, 1, 1], [], []>} : vector<16x144xf32>, vector<144x128xf32>, vector<16x128xf32> -> vector<16x128xf32>
    %44 = arith.addf %39, %43 : vector<16x128xf32>
    %c0_20 = arith.constant 0 : index
    %45 = memref.load %arg1[%c0_20] : memref<2xf32, #tpu.memory_space<smem>>
    %46 = vector.broadcast %45 : f32 to vector<16x128xf32>
    %47 = arith.mulf %46, %4 : vector<16x128xf32>
    %c0_21 = arith.constant 0 : index
    %c0_22 = arith.constant 0 : index
    %48 = vector.load %arg4[%c0_21, %c0_22] : memref<16x128xf32, #tpu.memory_space<vmem>>, vector<16x128xf32>
    %49 = arith.mulf %48, %25 : vector<16x128xf32>
    %50 = arith.addf %47, %49 : vector<16x128xf32>
    %c1_23 = arith.constant 1 : index
    %51 = memref.load %arg1[%c1_23] : memref<2xf32, #tpu.memory_space<smem>>
    %52 = vector.broadcast %51 : f32 to vector<16x128xf32>
    %53 = arith.mulf %52, %30 : vector<16x128xf32>
    %54 = arith.addf %50, %53 : vector<16x128xf32>
    %55 = arith.addf %54, %44 : vector<16x128xf32>
    %c0_24 = arith.constant 0 : index
    %c0_25 = arith.constant 0 : index
    %c0_26 = arith.constant 0 : index
    %56 = vector.load %arg5[%c0_24, %c0_25, %c0_26] : memref<1x16x128xf32, #tpu.memory_space<vmem>>, vector<1x16x128xf32>
    %57 = vector.shape_cast %56 : vector<1x16x128xf32> to vector<16x128xf32>
    %58 = vector.shape_cast %55 : vector<16x128xf32> to vector<1x16x128xf32>
    tpu.vector_store %arg5[%c0_24, %c0_25, %c0_26], %58 {strides = array<i32>} : memref<1x16x128xf32, #tpu.memory_space<vmem>>, vector<1x16x128xf32>,
    return
  }
  func.func @transform_0(%arg0: i32) -> i32 {
    %c0_i32 = arith.constant 0 : i32
    %c0_i32_0 = arith.constant 0 : i32
    return %c0_i32 : i32
  }
  func.func @transform_1(%arg0: i32) -> (i32, i32, i32) {
    %c0_i32 = arith.constant 0 : i32
    %c0_i32_0 = arith.constant 0 : i32
    %c0_i32_1 = arith.constant 0 : i32
    return %arg0, %c0_i32, %c0_i32_0 : i32, i32, i32
  }
  func.func @transform_2(%arg0: i32) -> (i32, i32, i32) {
    %c0_i32 = arith.constant 0 : i32
    %c0_i32_0 = arith.constant 0 : i32
    %c0_i32_1 = arith.constant 0 : i32
    %c0_i32_2 = arith.constant 0 : i32
    return %c0_i32, %c0_i32_0, %c0_i32_1 : i32, i32, i32
  }
  func.func @transform_3(%arg0: i32) -> (i32, i32) {
    %c0_i32 = arith.constant 0 : i32
    %c0_i32_0 = arith.constant 0 : i32
    %c0_i32_1 = arith.constant 0 : i32
    return %c0_i32, %c0_i32_0 : i32, i32
  }
  func.func @transform_4(%arg0: i32) -> (i32, i32, i32) {
    %c0_i32 = arith.constant 0 : i32
    %c0_i32_0 = arith.constant 0 : i32
    %c0_i32_1 = arith.constant 0 : i32
    return %arg0, %c0_i32, %c0_i32_0 : i32, i32, i32
  }
}

</mosaic_0001>

<bundles_post_ra>
// kernel: tpu_custom_call.1
= control target key start
LH: loop header
LB: loop body
LE: loop exit
PB: predicated region body
PF: predicated region fallthrough
CT: control target
= control target key end

     0   :  { %9 = vsyncpa [#allocation7], 0  ;;  %s1178_s0 = inlined_call_operand.hbm [shape: f32[2], index: 0, kind: input, shape index: {}]   ;;  %s1179_s1 = inlined_call_operand.hbm [shape: f32[1,16,128], index: 1, kind: input, shape index: {}]   ;;  %s1180_s2 = inlined_call_operand.hbm [shape: f32[3,144,128], index: 2, kind: input, shape index: {}]   ;;  %s1181_s3 = inlined_call_operand.hbm [shape: f32[16,128], index: 3, kind: input, shape index: {}]   ;;  %s1182_s4 = inlined_call_operand.hbm [shape: f32[1,16,128], index: 4, kind: output, shape index: {}]  }
   0x1   :  { %10 = vsyncpa [#allocation5], 0 }
   0x2   :  { %11 = vsyncpa [#allocation10], 0 }
   0x3   :  { %12 = vsyncpa [#allocation6], 0  ;;  %s882_s15 = smov [#allocation9]   ;;  %s883_s17 = smov [#allocation8]  }
   0x4   :  { %s38_s16 = sshll.u32 %s882_s15, 4  ;;  %s26_s18 = sshll.u32 %s883_s17, 4  ;;  %s39_s16 = int_to_ptr.vmem [resolvable:$true] %s38_s16  ;;  %s27_s18 = int_to_ptr.vmem [resolvable:$true] %s26_s18 }
   0x5   :  { %s776_s21 = scalar_lea.hbm %s1180_s2, 6912 }
   0x6   :  { %p777_p0 = scmp.ne.s32.totalorder %s1180_s2, %s776_s21  ;;  %p780_p1 = scmp.lt.u32.totalorder %s776_s21, %s1180_s2 }
   0x8   :  { %p782_p2 = pnand %p780_p1, %p777_p0 }
   0xa   :  { %785 = shalt.err (!%p782_p2)
}
   0xb   :  { %s786_s26 = scalar_lea.vmem %s39_s16, 6912  ;;  %p791_p4 = scmp.lt.s32.totalorder %s39_s16, %s39_s16 }
   0xc   :  { %p787_p3 = scmp.ne.s32.totalorder %s39_s16, %s786_s26  ;;  %p792_p5 = scmp.lt.s32.totalorder %s786_s26, %s786_s26 }
   0xe   :  { %p793_p6 = por %p792_p5, %p791_p4 }
  0x10   :  { %p794_p7 = pnand %p793_p6, %p787_p3 }
  0x12   :  { %797 = shalt.err (!%p794_p7)
}
  0x13   :  { %s884_s27 = smov 128   ;;  %s885_s28 = smov 8  }
  0x14   :  { %44 = dma.hbm_to_vmem [thread:$0]  %s1180_s2, 6912, %s39_s16, [#allocation10], %s884_s27, %s884_s27, %s885_s28  }
  0x15   :  { %s798_s7 = scalar_lea.hbm %s1178_s0, 16 }
  0x16   :  { %p799_p8 = scmp.ne.s32.totalorder %s1178_s0, %s798_s7  ;;  %p802_p9 = scmp.lt.u32.totalorder %s798_s7, %s1178_s0 }
  0x18   :  { %p804_p10 = pnand %p802_p9, %p799_p8 }
  0x1a   :  { %807 = shalt.err (!%p804_p10)
}
  0x1b   :  { %s886_s12 = smov [#allocation4]   ;;  %s808_s16 = scalar_lea.hbm %s1179_s1, 256 }
  0x1c   :  { %20 = dma.hbm_to_smem %s1178_s0, 16, %s886_s12, [#allocation7]  }
  0x1d   :  { %p809_p11 = scmp.ne.s32.totalorder %s1179_s1, %s808_s16  ;;  %p812_p12 = scmp.lt.u32.totalorder %s808_s16, %s1179_s1 }
  0x1f   :  { %p814_p13 = pnand %p812_p12, %p809_p11 }
  0x21   :  { %817 = shalt.err (!%p814_p13)
}
  0x22   :  { %s818_s22 = scalar_lea.vmem %s27_s18, 256  ;;  %p823_p1 = scmp.lt.s32.totalorder %s27_s18, %s27_s18 }
  0x23   :  { %p819_p0 = scmp.ne.s32.totalorder %s27_s18, %s818_s22  ;;  %p824_p2 = scmp.lt.s32.totalorder %s818_s22, %s818_s22 }
  0x25   :  { %p825_p3 = por %p824_p2, %p823_p1 }
  0x27   :  { %p826_p4 = pnand %p825_p3, %p819_p0 }
  0x29   :  { %829 = shalt.err (!%p826_p4)
}
  0x2a   :  { %32 = dma.hbm_to_vmem [thread:$0]  %s1179_s1, 256, %s27_s18, [#allocation5], %s884_s27, %s884_s27, %s885_s28  }
  0x2b   :  { %s887_s24 = smov [#allocation11]   ;;  %s830_s30 = scalar_lea.hbm %s1181_s3, 256 }
  0x2c   :  { %s50_s25 = sshll.u32 %s887_s24, 4  ;;  %p831_p5 = scmp.ne.s32.totalorder %s1181_s3, %s830_s30  ;;  %s51_s25 = int_to_ptr.vmem [resolvable:$true] %s50_s25 }
  0x2d   :  { %p834_p6 = scmp.lt.u32.totalorder %s830_s30, %s1181_s3 }
  0x2f   :  { %p836_p7 = pnand %p834_p6, %p831_p5 }
  0x31   :  { %839 = shalt.err (!%p836_p7)
}
  0x32   :  { %s840_s9 = scalar_lea.vmem %s51_s25, 256  ;;  %p845_p9 = scmp.lt.s32.totalorder %s51_s25, %s51_s25 }
  0x33   :  { %p841_p8 = scmp.ne.s32.totalorder %s51_s25, %s840_s9  ;;  %p846_p10 = scmp.lt.s32.totalorder %s840_s9, %s840_s9 }
  0x35   :  { %p847_p11 = por %p846_p10, %p845_p9 }
  0x37   :  { %p848_p12 = pnand %p847_p11, %p841_p8 }
  0x39   :  { %851 = shalt.err (!%p848_p12)
}
  0x3a   :  { %56 = dma.hbm_to_vmem [thread:$0]  %s1181_s3, 256, %s51_s25, [#allocation10], %s884_s27, %s884_s27, %s885_s28  }
  0x3b   :  { %874 = dma.done.wait [#allocation7], 16  }
  0x3c   :  { %875 = vsyncadd [#allocation7], 4294967280 }
  0x3d   :  { %876 = dma.done.wait [#allocation5], 256  }
  0x3e   :  { %877 = vsyncadd [#allocation5], 4294967040 }
  0x3f   :  { %878 = dma.done.wait [#allocation10], 7168  }
  0x40   :  { %879 = vsyncadd [#allocation10], 4294960128 }
  0x41   :  { %69 = sfence }
  0x42   :  { %v976_v0 = vld [vmem:[#allocation8] sm:$0xff]  ;;  %v978_v1 = vld [vmem:[#allocation8 + $0x8] sm:$0xff]  ;;  %vm92_vm0 = vcmask 1040384   ;;  %v888_v4 = vmov 0.0|0.0   ;;  %v293_v5 = vld [vmem:[#allocation9] sm:$0xff]  ;;  %vm75_vm1 = vcmask 130048  }
  0x43   :  { %v93_v2 = vrot.slane %v976_v0, 7  ;;  %v94_v3 = vrot.slane %v978_v1, 7  ;;  %692 = vmatprep.subr.bf16.mxu1 %v888_v4  ;;  %v294_v6 = vld [vmem:[#allocation9 + $0x8] sm:$0xff]  ;;  %v295_v7 = vld [vmem:[#allocation9 + $0x10] sm:$0xff]  ;;  %665 = vmatprep.subr.bf16.mxu0 %v888_v4  ;;  %v296_v9 = vld [vmem:[#allocation9 + $0x18] sm:$0xff]  ;;  %v889_v14 = vmov 0.0  }
  0x44   :  { %v693_v8 = vpack.c.bf16 %v294_v6, %v293_v5  ;;  %v312_v10 = vld [vmem:[#allocation9 + $0x90] sm:$0xff]  ;;  %v313_v11 = vld [vmem:[#allocation9 + $0x98] sm:$0xff]  ;;  %v314_v13 = vld [vmem:[#allocation9 + $0xa0] sm:$0xff]  ;;  %74 = vst [vmem:[#allocation2] sm:$0xff] %v889_v14  ;;  %v696_v16 = vpack.c.bf16 %v296_v9, %v295_v7  ;;  %v890_v18 = vmov -3e+38  }
  0x45   :  { %96 = vrot.lane.b32.xlu0 %v93_v2, %s885_s28  ;;  %100 = vrot.lane.b32.xlu1 %v94_v3, %s885_s28  ;;  %v666_v12 = vpack.c.bf16 %v313_v11, %v312_v10  ;;  %76 = vst.msk [vmem:[#allocation2 + $0x8] sm:$0xff] %vm75_vm1, %v889_v14  ;;  %77 = vst [vmem:[#allocation2 + $0x10] sm:$0xff] %v889_v14  ;;  %v95_v15 = vsel %vm92_vm0, %v93_v2, %v94_v3  ;;  %v315_v17 = vld [vmem:[#allocation9 + $0xa8] sm:$0xff]  ;;  %vm80_vm2 = vcmask 123904   ;;  %v297_v19 = vld [vmem:[#allocation9 + $0x20] sm:$0xff]  ;;  %vm105_vm3 = vcmask 1047617  }
  0x46   :  { %78 = vst.msk [vmem:[#allocation2 + $0x18] sm:$0xff] %vm75_vm1, %v889_v14  ;;  %79 = vst [vmem:[#allocation2 + $0x20] sm:$0x3] %v889_v14  ;;  %694 = vmatpush1.bf16.msra.mxu1 %v693_v8  ;;  %v298_v20 = vld [vmem:[#allocation9 + $0x28] sm:$0xff]  ;;  %v669_v21 = vpack.c.bf16 %v315_v17, %v314_v13  ;;  %v316_v22 = vld [vmem:[#allocation9 + $0xb0] sm:$0xff]  ;;  %vm107_vm4 = vcmask 64513  }
  0x47   :  { %82 = vst [vmem:[#allocation3] sm:$0xff] %v890_v18  ;;  %83 = vst.msk [vmem:[#allocation3 + $0x8] sm:$0xff] %vm75_vm1, %v890_v18  ;;  %695 = vmatprep.subr.bf16.mxu1 %v888_v4  ;;  %667 = vmatpush1.bf16.msra.mxu0 %v666_v12  ;;  %v317_v23 = vld [vmem:[#allocation9 + $0xb8] sm:$0xff]  ;;  %v699_v24 = vpack.c.bf16 %v298_v20, %v297_v19  ;;  %v299_v25 = vld [vmem:[#allocation9 + $0x30] sm:$0xff]  ;;  %vm113_vm5 = vcmask 1040448   ;;  %vm115_vm6 = vcmask 57344  }
  0x48   :  { %84 = vst [vmem:[#allocation3 + $0x10] sm:$0xff] %v890_v18  ;;  %85 = vst.msk [vmem:[#allocation3 + $0x18] sm:$0xff] %vm75_vm1, %v890_v18  ;;  %668 = vmatprep.subr.bf16.mxu0 %v888_v4  ;;  %v300_v26 = vld [vmem:[#allocation9 + $0x38] sm:$0xff]  ;;  %v672_v27 = vpack.c.bf16 %v317_v23, %v316_v22  ;;  %v318_v28 = vld [vmem:[#allocation9 + $0xc0] sm:$0xff]  ;;  %vm109_vm7 = vcmask 1047616   ;;  %vm111_vm8 = vcmask 64512  }
  0x49   :  { %86 = vst [vmem:[#allocation3 + $0x20] sm:$0x3] %v890_v18  ;;  %81 = vst.msk [vmem:[#allocation2 + $0x28] sm:$0x3] %vm80_vm2, %v889_v14  ;;  %98 = vrot.lane.b32.xlu0 %v95_v15, %s885_s28  ;;  %v319_v29 = vld [vmem:[#allocation9 + $0xc8] sm:$0xff]  ;;  %v702_v30 = vpack.c.bf16 %v300_v26, %v299_v25  ;;  %v301_v31 = vld [vmem:[#allocation9 + $0x40] sm:$0xff] }
  0x4a   :  { %87 = vst.msk [vmem:[#allocation3 + $0x28] sm:$0x3] %vm80_vm2, %v890_v18  ;;  %697 = vmatpush1.bf16.msra.mxu1 %v696_v16  ;;  %v302_v32 = vld [vmem:[#allocation9 + $0x48] sm:$0xff]  ;;  %v675_v33 = vpack.c.bf16 %v319_v29, %v318_v28  ;;  %v320_v34 = vld [vmem:[#allocation9 + $0xd0] sm:$0xff]  ;;  %v321_v35 = vld [vmem:[#allocation9 + $0xd8] sm:$0xff]  ;;  %vm147_vm9 = vcmask 1046528  }
  0x4b   :  { %698 = vmatprep.subr.bf16.mxu1 %v888_v4  ;;  %670 = vmatpush1.bf16.msra.mxu0 %v669_v21  ;;  %v705_v36 = vpack.c.bf16 %v302_v32, %v301_v31  ;;  %v303_v37 = vld [vmem:[#allocation9 + $0x50] sm:$0xff]  ;;  %v304_v38 = vld [vmem:[#allocation9 + $0x58] sm:$0xff]  ;;  %v678_v39 = vpack.c.bf16 %v321_v35, %v320_v34  ;;  %v322_v40 = vld [vmem:[#allocation9 + $0xe0] sm:$0xff]  ;;  %vm166_vm10 = vcmask 1045504   ;;  %s891_s3 = smov 120   ;;  %s892_s10 = smov 112  }
  0x4c   :  { %671 = vmatprep.subr.bf16.mxu0 %v888_v4  ;;  %v323_v41 = vld [vmem:[#allocation9 + $0xe8] sm:$0xff]  ;;  %v708_v42 = vpack.c.bf16 %v304_v38, %v303_v37  ;;  %v305_v43 = vld [vmem:[#allocation9 + $0x60] sm:$0xff]  ;;  %v324_v46 = vld [vmem:[#allocation9 + $0xf0] sm:$0xff]  ;;  %vm239_vm11 = vcmask 982016   ;;  %s1146_s11 = sld [smem:[#allocation4]]  ;;  %vm254_vm12 = vcmask 916480  }
  0x4d   :  { %v306_v44 = vld [vmem:[#allocation9 + $0x68] sm:$0xff]  ;;  %v681_v45 = vpack.c.bf16 %v323_v41, %v322_v40  ;;  %v325_v47 = vld [vmem:[#allocation9 + $0xf8] sm:$0xff]  ;;  %v307_v49 = vld [vmem:[#allocation9 + $0x70] sm:$0xff]  ;;  %s664_s12 = sld [smem:[#allocation4 + $0x1]]  ;;  %s893_s13 = smov [#allocation12]  }
  0x4e   :  { %700 = vmatpush1.bf16.msra.mxu1 %v699_v24  ;;  %v711_v48 = vpack.c.bf16 %v306_v44, %v305_v43  ;;  %v308_v50 = vld [vmem:[#allocation9 + $0x78] sm:$0xff]  ;;  %v684_v51 = vpack.c.bf16 %v325_v47, %v324_v46  ;;  %v326_v52 = vld [vmem:[#allocation9 + $0x100] sm:$0xff]  ;;  %v327_v53 = vld [vmem:[#allocation9 + $0x108] sm:$0xff]  ;;  %s644_s14 = sshll.u32 %s893_s13, 4  ;;  %s645_s14 = int_to_ptr.vmem [resolvable:$true] %s644_s14 }
  0x4f   :  { %701 = vmatprep.subr.bf16.mxu1 %v888_v4  ;;  %673 = vmatpush1.bf16.msra.mxu0 %v672_v27  ;;  %v714_v54 = vpack.c.bf16 %v308_v50, %v307_v49  ;;  %v309_v55 = vld [vmem:[#allocation9 + $0x80] sm:$0xff]  ;;  %v310_v56 = vld [vmem:[#allocation9 + $0x88] sm:$0xff]  ;;  %v687_v57 = vpack.c.bf16 %v327_v53, %v326_v52  ;;  %v328_v58 = vld [vmem:[#allocation9 + $0x110] sm:$0xff]  ;;  %s852_s2 = scalar_lea.vmem %s645_s14, 256  ;;  %p857_p0 = scmp.lt.s32.totalorder %s645_s14, %s645_s14 }
  0x50   :  { %674 = vmatprep.subr.bf16.mxu0 %v888_v4  ;;  %v329_v59 = vld [vmem:[#allocation9 + $0x118] sm:$0xff]  ;;  %v717_v60 = vpack.c.bf16 %v310_v56, %v309_v55  ;;  %v508_v3 = vld [vmem:[#allocation9 + $0x120] sm:$0xff]  ;;  %v509_v5 = vld [vmem:[#allocation9 + $0x128] sm:$0xff]  ;;  %p853_p13 = scmp.ne.s32.totalorder %s645_s14, %s852_s2  ;;  %p858_p1 = scmp.lt.s32.totalorder %s852_s2, %s852_s2 }
  0x51   :  { %v690_v61 = vpack.c.bf16 %v329_v59, %v328_v58  ;;  %v510_v6 = vld [vmem:[#allocation9 + $0x130] sm:$0xff]  ;;  %v511_v7 = vld [vmem:[#allocation9 + $0x138] sm:$0xff]  ;;  %v512_v8 = vld [vmem:[#allocation9 + $0x140] sm:$0xff]  ;;  %v720_v15 = vpack.c.bf16 %v509_v5, %v508_v3 }
  0x52   :  { %703 = vmatpush1.bf16.msra.mxu1 %v702_v30  ;;  %v513_v9 = vld [vmem:[#allocation9 + $0x148] sm:$0xff]  ;;  %v1019_v18 = vpack.c.bf16 %v511_v7, %v510_v6  ;;  %v514_v53 = vld [vmem:[#allocation9 + $0x150] sm:$0xff]  ;;  %v516_v7 = vld [vmem:[#allocation9 + $0x160] sm:$0xff]  ;;  %p859_p2 = por %p858_p1, %p857_p0 }
  0x53   :  { %704 = vmatprep.subr.bf16.mxu1 %v888_v4  ;;  %676 = vmatpush1.bf16.msra.mxu0 %v675_v33  ;;  %v1023_v22 = vpack.c.bf16 %v513_v9, %v512_v8  ;;  %v517_v8 = vld [vmem:[#allocation9 + $0x168] sm:$0xff] }
  0x54   :  { %677 = vmatprep.subr.bf16.mxu0 %v888_v4  ;;  %p860_p3 = pnand %p859_p2, %p853_p13 }
  0x56   :  { %706 = vmatpush1.bf16.msra.mxu1 %v705_v36 }
  0x57   :  { %707 = vmatprep.subr.bf16.mxu1 %v888_v4  ;;  %679 = vmatpush1.bf16.msra.mxu0 %v678_v39 }
  0x58   :  { %680 = vmatprep.subr.bf16.mxu0 %v888_v4 }
  0x5a   :  { %709 = vmatpush1.bf16.msra.mxu1 %v708_v42 }
  0x5b   :  { %710 = vmatprep.subr.bf16.mxu1 %v888_v4  ;;  %682 = vmatpush1.bf16.msra.mxu0 %v681_v45 }
  0x5c   :  { %683 = vmatprep.subr.bf16.mxu0 %v888_v4 }
  0x5e   :  { %712 = vmatpush1.bf16.msra.mxu1 %v711_v48 }
  0x5f   :  { %713 = vmatprep.subr.bf16.mxu1 %v888_v4  ;;  %685 = vmatpush1.bf16.msra.mxu0 %v684_v51 }
  0x60   :  { %686 = vmatprep.subr.bf16.mxu0 %v888_v4 }
  0x62   :  { %715 = vmatpush1.bf16.msra.mxu1 %v714_v54  ;;  %v515_v54 = vld [vmem:[#allocation9 + $0x158] sm:$0xff] }
  0x63   :  { %716 = vmatprep.subr.bf16.mxu1 %v888_v4  ;;  %688 = vmatpush1.bf16.msra.mxu0 %v687_v57 }
  0x64   :  { %689 = vmatprep.subr.bf16.mxu0 %v888_v4 }
  0x66   :  { %718 = vmatpush1.bf16.msra.mxu1 %v717_v60 }
  0x67   :  { %746 = vmatprep.subr.bf16.mxu1 %v888_v4  ;;  %691 = vmatpush1.bf16.msra.mxu0 %v690_v61 }
  0x68   :  { %719 = vmatprep.subr.bf16.mxu0 %v888_v4 }
  0xb7   :  { %v97_v62 = vpop.permute.xlu0 %96  ;;  %v101_v63 = vpop.permute.xlu1 %100 }
  0xb8   :  { %106 = vst.msk [vmem:[#allocation2] sm:$0xfe] %vm105_vm3, %v97_v62  ;;  %117 = vst.msk [vmem:[#allocation3] sm:$0xfe] %vm105_vm3, %v97_v62 }
  0xb9   :  { %108 = vst.msk [vmem:[#allocation2 + $0x8] sm:$0xfe] %vm107_vm4, %v97_v62  ;;  %118 = vst.msk [vmem:[#allocation3 + $0x8] sm:$0xfe] %vm107_vm4, %v97_v62 }
  0xba   :  { %114 = vst.msk [vmem:[#allocation2 + $0x20] sm:$0x1] %vm113_vm5, %v101_v63  ;;  %121 = vst.msk [vmem:[#allocation3 + $0x20] sm:$0x1] %vm113_vm5, %v101_v63 }
  0xbb   :  { %116 = vst.msk [vmem:[#allocation2 + $0x28] sm:$0x1] %vm115_vm6, %v101_v63  ;;  %122 = vst.msk [vmem:[#allocation3 + $0x28] sm:$0x1] %vm115_vm6, %v101_v63  ;;  %v99_v2 = vpop.permute.xlu0 %98  ;;  %v729_v63 = vpack.c.bf16 %v515_v54, %v514_v53 }
  0xbc   :  { %110 = vst.msk [vmem:[#allocation2 + $0x10] sm:$0xff] %vm109_vm7, %v99_v2  ;;  %119 = vst.msk [vmem:[#allocation3 + $0x10] sm:$0xff] %vm109_vm7, %v99_v2 }
  0xbd   :  { %112 = vst.msk [vmem:[#allocation2 + $0x18] sm:$0xff] %vm111_vm8, %v99_v2  ;;  %120 = vst.msk [vmem:[#allocation3 + $0x18] sm:$0xff] %vm111_vm8, %v99_v2 }
  0xbf   :  { %v123_v11 = vld [vmem:[#allocation2] sm:$0xff] }
  0xc0   :  { %v124_v10 = vld [vmem:[#allocation2 + $0x8] sm:$0xff]  ;;  %v1014_v14 = vmax.f32 %v123_v11, 0.0  ;;  %v148_v21 = vrot.slane %v123_v11, 1  ;;  %v167_v27 = vrot.slane %v123_v11, 2 }
  0xc1   :  { %v1012_v13 = vmax.f32 %v124_v10, 0.0  ;;  %v1017_v17 = vld [vmem:[#allocation2 + $0x20] sm:$0x3]  ;;  %v151_v19 = vrot.slane %v124_v10, 1  ;;  %v170_v20 = vrot.slane %v124_v10, 2 }
  0xc2   :  { %v1010_v12 = vld [vmem:[#allocation2 + $0x28] sm:$0x3]  ;;  %v139_v28 = vmax.f32 %v1017_v17, 0.0  ;;  %v336_v31 = vrot.slane %v1014_v14, 1  ;;  %v154_v44 = vrot.slane %v1017_v17, 1  ;;  %v173_v58 = vrot.slane %v1017_v17, 2 }
  0xc3   :  { %v140_v16 = vmax.f32 %v1010_v12, 0.0  ;;  %660 = vmatprep.mubr.msk.f32.mxu1 %vm75_vm1, %v1012_v13  ;;  %v1026_v24 = vld [vmem:[#allocation2 + $0x10] sm:$0xff]  ;;  %v339_v25 = vrot.slane %v1012_v13, 1  ;;  %v156_v40 = vrot.slane %v1010_v12, 1  ;;  %v175_v52 = vrot.slane %v1010_v12, 2  ;;  %v1079_v9 = vld [vmem:[#allocation3 + $0x10] sm:$0xff] }
  0xc4   :  { %497 = vmatmul.mubr.f32.vlgmr.msra.gmra.mrb[0].mxu1 %v1014_v14  ;;  %v126_v23 = vld [vmem:[#allocation2 + $0x18] sm:$0xff]  ;;  %v1033_v30 = vmax.f32 %v1026_v24, 0.0  ;;  %v149_v34 = vrot.slane %v1026_v24, 1  ;;  %v168_v35 = vrot.slane %v1026_v24, 2  ;;  %v342_v43 = vrot.slane %v139_v28, 1  ;;  %v1072_v3 = vld [vmem:[#allocation3 + $0x18] sm:$0xff] }
  0xc5   :  { %v534_v26 = vrot.slane %v140_v16, 2  ;;  %755 = vmatpush1.bf16.msra.mxu1 %v720_v15  ;;  %v1030_v29 = vmax.f32 %v126_v23, 0.0  ;;  %v152_v32 = vrot.slane %v126_v23, 1  ;;  %v171_v33 = vrot.slane %v126_v23, 2 }
  0xc6   :  { %747 = vmatprep.subr.bf16.mxu1 %v888_v4  ;;  %v344_v36 = vrot.slane %v140_v16, 1  ;;  %v337_v39 = vrot.slane %v1033_v30, 1  ;;  %v150_v42 = vsel %vm147_vm9, %v148_v21, %v149_v34  ;;  %v169_v51 = vsel %vm166_vm10, %v167_v27, %v168_v35 }
  0xc7   :  { %661 = vmatprep.mubr.msk.f32.mxu1 %vm75_vm1, %v1030_v29  ;;  %v340_v37 = vrot.slane %v1030_v29, 1  ;;  %v530_v38 = vrot.slane %v1030_v29, 2  ;;  %v153_v41 = vsel %vm147_vm9, %v151_v19, %v152_v32  ;;  %v172_v49 = vsel %vm166_vm10, %v170_v20, %v171_v33  ;;  %v129_v19 = vld [vmem:[#allocation3] sm:$0xff] }
  0xc8   :  { %502 = vmatmul.mubr.f32.gmra.mrb[2].mxu1 %v1033_v30  ;;  %v338_v47 = vsel %vm147_vm9, %v336_v31, %v337_v39  ;;  %v163_v48 = vadd.f32 %v153_v41, %v124_v10  ;;  %v162_v50 = vadd.f32 %v150_v42, %v123_v11  ;;  %v157_v57 = vsel %vm147_vm9, %v152_v32, %v156_v40 }
  0xc9   :  { %756 = vmatpush1.bf16.msra.mxu1 %v1019_v18  ;;  %v341_v45 = vsel %vm147_vm9, %v339_v25, %v340_v37  ;;  %v535_v46 = vsel %vm166_vm10, %v530_v38, %v534_v26  ;;  %v345_v56 = vsel %vm147_vm9, %v340_v37, %v344_v36  ;;  %v165_v60 = vadd.f32 %v157_v57, %v126_v23  ;;  %v134_v23 = vld [vmem:[#allocation3 + $0x28] sm:$0x3]  ;;  %v133_v26 = vld [vmem:[#allocation3 + $0x20] sm:$0x3] }
  0xca   :  { %658 = vmatprep.mubr.msk.f32.mxu0 %vm75_vm1, %v341_v45  ;;  %663 = vmatprep.mubr.msk.f32.mxu1 %vm75_vm1, %v535_v46  ;;  %v182_v55 = vadd.f32 %v172_v49, %v163_v48  ;;  %v1064_v59 = vadd.f32 %v169_v51, %v162_v50  ;;  %v155_v61 = vsel %vm147_vm9, %v149_v34, %v154_v44  ;;  %v529_v2 = vrot.slane %v1012_v13, 2  ;;  %v130_v13 = vld [vmem:[#allocation3 + $0x8] sm:$0xff]  ;;  %v520_v36 = vld [vmem:[#allocation9 + $0x180] sm:$0xff]  ;;  %v523_v48 = vld [vmem:[#allocation9 + $0x198] sm:$0xff] }
  0xcb   :  { %418 = vmatmul.mubr.f32.vlgmr.msra.gmra.mrb[0].mxu0 %v338_v47  ;;  %748 = vmatprep.subr.bf16.mxu1 %v888_v4  ;;  %v164_v62 = vadd.f32 %v155_v61, %v1026_v24  ;;  %v343_v5 = vsel %vm147_vm9, %v337_v39, %v342_v43  ;;  %v176_v6 = vsel %vm166_vm10, %v171_v33, %v175_v52  ;;  %v195_v16 = vrot.slane %v1072_v3, 1  ;;  %v519_v24 = vld [vmem:[#allocation9 + $0x178] sm:$0xff]  ;;  %v522_v47 = vld [vmem:[#allocation9 + $0x190] sm:$0xff]  ;;  %v524_v57 = vld [vmem:[#allocation9 + $0x1a0] sm:$0xff] }
  0xcc   :  { %721 = vmatpush1.bf16.msra.mxu0 %v720_v15  ;;  %659 = vmatprep.mubr.msk.f32.mxu0 %vm75_vm1, %v345_v56  ;;  %v184_v10 = vadd.f32 %v176_v6, %v165_v60  ;;  %v174_v11 = vsel %vm166_vm10, %v168_v35, %v173_v58  ;;  %v531_v12 = vsel %vm166_vm10, %v529_v2, %v530_v38  ;;  %v192_v21 = vrot.slane %v1079_v9, 1  ;;  %v525_v58 = vld [vmem:[#allocation9 + $0x1a8] sm:$0xff] }
  0xcd   :  { %233 = vrot.lane.b32.xlu0 %v182_v55, %s891_s3  ;;  %757 = vmatpush1.bf16.msra.mxu1 %v1023_v22  ;;  %v1085_v15 = vadd.f32 %v174_v11, %v164_v62  ;;  %v732_v20 = vpack.c.bf16 %v517_v8, %v516_v7  ;;  %v194_v25 = vrot.slane %v130_v13, 1  ;;  %v191_v27 = vrot.slane %v129_v19, 1 }
  0xce   :  { %231 = vrot.lane.b32.xlu1 %v1064_v59, %s891_s3  ;;  %722 = vmatprep.subr.bf16.mxu0 %v888_v4  ;;  %v199_v31 = vrot.slane %v134_v23, 1  ;;  %v197_v34 = vrot.slane %v133_v26, 1  ;;  %v213_v35 = vrot.slane %v1072_v3, 2  ;;  %v210_v38 = vrot.slane %v1079_v9, 2 }
  0xcf   :  { %423 = vmatmul.mubr.f32.gmra.mrb[2].mxu0 %v343_v5  ;;  %749 = vmatprep.subr.bf16.mxu1 %v888_v4  ;;  %v196_v29 = vsel %vm147_vm9, %v194_v25, %v195_v16  ;;  %v193_v33 = vsel %vm147_vm9, %v191_v27, %v192_v21  ;;  %v212_v39 = vrot.slane %v130_v13, 2  ;;  %v209_v42 = vrot.slane %v129_v19, 2 }
  0xd0   :  { %724 = vmatpush1.bf16.msra.mxu0 %v1019_v18  ;;  %662 = vmatprep.mubr.msk.f32.mxu0 %vm75_vm1, %v531_v12  ;;  %v518_v18 = vld [vmem:[#allocation9 + $0x170] sm:$0xff]  ;;  %v206_v37 = vmax.f32 %v130_v13, %v196_v29  ;;  %v205_v40 = vmax.f32 %v129_v19, %v193_v33  ;;  %v200_v41 = vsel %vm147_vm9, %v195_v16, %v199_v31  ;;  %v217_v46 = vrot.slane %v134_v23, 2 }
  0xd1   :  { %237 = vrot.lane.b32.xlu0 %v184_v10, %s891_s3  ;;  %758 = vmatpush1.bf16.msra.mxu1 %v729_v63  ;;  %v735_v32 = vpack.c.bf16 %v519_v24, %v518_v18  ;;  %v198_v44 = vsel %vm147_vm9, %v192_v21, %v197_v34  ;;  %v214_v45 = vsel %vm166_vm10, %v212_v39, %v213_v35  ;;  %v215_v52 = vrot.slane %v133_v26, 2 }
  0xd2   :  { %235 = vrot.lane.b32.xlu1 %v1085_v15, %s891_s3  ;;  %725 = vmatprep.subr.bf16.mxu0 %v888_v4  ;;  %v224_v49 = vmax.f32 %v206_v37, %v214_v45  ;;  %v211_v50 = vsel %vm166_vm10, %v209_v42, %v210_v38  ;;  %v208_v51 = vmax.f32 %v1072_v3, %v200_v41  ;;  %v527_v2 = vrot.slane %v1033_v30, 2  ;;  %v624_v41 = vld [vmem:[#allocation11 + $0x8] sm:$0xff] }
  0xd3   :  { %750 = vmatprep.subr.bf16.mxu1 %v888_v4  ;;  %v1115_v53 = vmax.f32 %v205_v40, %v211_v50  ;;  %v207_v54 = vmax.f32 %v1079_v9, %v198_v44  ;;  %v218_v56 = vsel %vm166_vm10, %v213_v35, %v217_v46  ;;  %v216_v61 = vsel %vm166_vm10, %v210_v38, %v215_v52 }
  0xd4   :  { %727 = vmatpush1.bf16.msra.mxu0 %v1023_v22  ;;  %v521_v22 = vld [vmem:[#allocation9 + $0x188] sm:$0xff]  ;;  %v226_v60 = vmax.f32 %v208_v51, %v218_v56  ;;  %v532_v3 = vrot.slane %v139_v28, 2  ;;  %v526_v17 = vrot.slane %v1014_v14, 2  ;;  %v620_v44 = vstv %s1146_s11 }
  0xd5   :  { %248 = vrot.lane.b32.xlu0 %v182_v55, %s892_s10  ;;  %759 = vmatpush1.bf16.msra.mxu1 %v732_v20  ;;  %v738_v43 = vpack.c.bf16 %v521_v22, %v520_v36  ;;  %v741_v55 = vpack.c.bf16 %v523_v48, %v522_v47  ;;  %v1125_v62 = vmax.f32 %v207_v54, %v216_v61 }
  0xd6   :  { %246 = vrot.lane.b32.xlu1 %v1064_v59, %s892_s10  ;;  %728 = vmatprep.subr.bf16.mxu0 %v888_v4  ;;  %v533_v5 = vsel %vm166_vm10, %v527_v2, %v532_v3  ;;  %v528_v28 = vsel %vm166_vm10, %v526_v17, %v527_v2  ;;  %v622_v45 = vmul.f32 %v620_v44, %v978_v1 }
  0xd7   :  { %751 = vmatprep.subr.bf16.mxu1 %v888_v4 }
  0xd8   :  { %730 = vmatpush1.bf16.msra.mxu0 %v729_v63  ;;  %v744_v63 = vpack.c.bf16 %v525_v58, %v524_v57 }
  0xd9   :  { %252 = vrot.lane.b32.xlu0 %v184_v10, %s892_s10  ;;  %760 = vmatpush1.bf16.msra.mxu1 %v735_v32 }
  0xda   :  { %250 = vrot.lane.b32.xlu1 %v1085_v15, %s892_s10  ;;  %731 = vmatprep.subr.bf16.mxu0 %v888_v4 }
  0xdb   :  { %752 = vmatprep.subr.bf16.mxu1 %v888_v4 }
  0xdc   :  { %733 = vmatpush1.bf16.msra.mxu0 %v732_v20 }
  0xdd   :  { %267 = vrot.lane.b32.xlu0 %v224_v49, %s891_s3  ;;  %761 = vmatpush1.bf16.msra.mxu1 %v738_v43 }
  0xde   :  { %265 = vrot.lane.b32.xlu1 %v1115_v53, %s891_s3  ;;  %734 = vmatprep.subr.bf16.mxu0 %v888_v4 }
  0xdf   :  { %753 = vmatprep.subr.bf16.mxu1 %v888_v4 }
  0xe0   :  { %736 = vmatpush1.bf16.msra.mxu0 %v735_v32 }
  0xe1   :  { %271 = vrot.lane.b32.xlu0 %v226_v60, %s891_s3  ;;  %762 = vmatpush1.bf16.msra.mxu1 %v741_v55 }
  0xe2   :  { %269 = vrot.lane.b32.xlu1 %v1125_v62, %s891_s3  ;;  %737 = vmatprep.subr.bf16.mxu0 %v888_v4 }
  0xe3   :  { %754 = vmatprep.subr.bf16.mxu1 %v888_v4 }
  0xe4   :  { %739 = vmatpush1.bf16.msra.mxu0 %v738_v43 }
  0xe5   :  { %281 = vrot.lane.b32.xlu0 %v224_v49, %s892_s10  ;;  %763 = vmatpush1.bf16.msra.mxu1 %v744_v63 }
  0xe6   :  { %279 = vrot.lane.b32.xlu1 %v1115_v53, %s892_s10  ;;  %740 = vmatprep.subr.bf16.mxu0 %v888_v4 }
  0xe8   :  { %742 = vmatpush1.bf16.msra.mxu0 %v741_v55  ;;  %612 = vmatmul.mubr.f32.vlgmr.msra.gmra.mrb[4].mxu1 %v533_v5  ;;  %v623_v55 = vld [vmem:[#allocation11] sm:$0xff] }
  0xe9   :  { %285 = vrot.lane.b32.xlu0 %v226_v60, %s892_s10  ;;  %743 = vmatprep.subr.bf16.mxu0 %v888_v4 }
  0xea   :  { %283 = vrot.lane.b32.xlu1 %v1125_v62, %s892_s10 }
  0xec   :  { %745 = vmatpush1.bf16.msra.mxu0 %v744_v63 }
  0xef   :  { %607 = vmatmul.mubr.f32.vlgmr.msra.gmra.mrb[4].mxu0 %v528_v28 }
 0x13f   :  { %v234_v30 = vpop.permute.xlu0 %233 }
 0x140   :  { %v232_v6 = vpop.permute.xlu1 %231 }
 0x141   :  { %v240_v42 = vsel %vm239_vm11, %v232_v6, %v234_v30 }
 0x142   :  { %v244_v49 = vadd.f32 %v240_v42, %v1064_v59 }
 0x143   :  { %v238_v7 = vpop.permute.xlu0 %237 }
 0x144   :  { %v236_v8 = vpop.permute.xlu1 %235 }
 0x145   :  { %v241_v33 = vsel %vm239_vm11, %v236_v8, %v238_v7 }
 0x146   :  { %v245_v37 = vadd.f32 %v241_v33, %v1085_v15  ;;  %v630_v15 = vstv %s664_s12 }
 0x147   :  { %v249_v9 = vpop.permute.xlu0 %248 }
 0x148   :  { %v247_v10 = vpop.permute.xlu1 %246 }
 0x149   :  { %v255_v46 = vsel %vm254_vm12, %v247_v10, %v249_v9 }
 0x14a   :  { %v259_v52 = vadd.f32 %v255_v46, %v244_v49 }
 0x14b   :  { %v253_v11 = vpop.permute.xlu0 %252 }
 0x14c   :  { %v251_v12 = vpop.permute.xlu1 %250  ;;  %v625_v63 = vmul.f32 %v623_v55, %v259_v52 }
 0x14d   :  { %v256_v36 = vsel %vm254_vm12, %v251_v12, %v253_v11 }
 0x14e   :  { %v260_v39 = vadd.f32 %v256_v36, %v245_v37 }
 0x14f   :  { %v268_v4 = vpop.permute.xlu0 %267 }
 0x150   :  { %v266_v20 = vpop.permute.xlu1 %265  ;;  %v626_v47 = vmul.f32 %v624_v41, %v260_v39 }
 0x151   :  { %v273_v48 = vsel %vm239_vm11, %v266_v20, %v268_v4 }
 0x152   :  { %v277_v54 = vmax.f32 %v1115_v53, %v273_v48  ;;  %v628_v56 = vadd.f32 %v626_v47, %v622_v45 }
 0x153   :  { %v272_v24 = vpop.permute.xlu0 %271 }
 0x154   :  { %v270_v25 = vpop.permute.xlu1 %269 }
 0x155   :  { %v274_v22 = vsel %vm239_vm11, %v270_v25, %v272_v24 }
 0x156   :  { %v278_v40 = vmax.f32 %v1125_v62, %v274_v22  ;;  %v621_v62 = vmul.f32 %v620_v44, %v976_v0 }
 0x157   :  { %v282_v31 = vpop.permute.xlu0 %281 }
 0x158   :  { %v280_v32 = vpop.permute.xlu1 %279  ;;  %v627_v59 = vadd.f32 %v625_v63, %v621_v62 }
 0x159   :  { %v287_v50 = vsel %vm254_vm12, %v280_v32, %v282_v31 }
 0x15a   :  { %v291_v57 = vmax.f32 %v277_v54, %v287_v50 }
 0x15b   :  { %v286_v34 = vpop.permute.xlu0 %285 }
 0x15c   :  { %v284_v35 = vpop.permute.xlu1 %283  ;;  %v631_v3 = vmul.f32 %v630_v15, %v291_v57 }
 0x15d   :  { %v288_v38 = vsel %vm254_vm12, %v284_v35, %v286_v34 }
 0x15e   :  { %v292_v43 = vmax.f32 %v278_v40, %v288_v38  ;;  %v633_v53 = vadd.f32 %v631_v3, %v627_v59 }
 0x160   :  { %v632_v51 = vmul.f32 %v630_v15, %v292_v43 }
 0x162   :  { %v634_v61 = vadd.f32 %v632_v51, %v628_v56 }
 0x197   :  { %v498_v13 = vpop.f32.mrb[0].mxu1 }
 0x198   :  { %v500_v16 = vpop.f32.mrb[1].mxu1 }
 0x19b   :  { %v503_v19 = vpop.f32.mrb[2].mxu1 }
 0x19c   :  { %v505_v21 = vpop.f32.mrb[3].mxu1 }
 0x19e   :  { %v419_v23 = vpop.f32.mrb[0].mxu0 }
 0x19f   :  { %v499_v14 = vadd.f32 %v498_v13, %v419_v23  ;;  %v421_v18 = vpop.f32.mrb[1].mxu0 }
 0x1a2   :  { %v424_v26 = vpop.f32.mrb[2].mxu0 }
 0x1a3   :  { %v504_v27 = vadd.f32 %v503_v19, %v424_v26  ;;  %v426_v29 = vpop.f32.mrb[3].mxu0 }
 0x1bb   :  { %v613_v58 = vpop.f32.mrb[4].mxu1 }
 0x1bc   :  { %v618_v60 = vadd.f32 %v613_v58, %v504_v27  ;;  %v615_v1 = vpop.f32.mrb[5].mxu1 }
 0x1be   :  { %v636_v2 = vadd.f32 %v634_v61, %v618_v60 }
 0x1c0   :  { %638 = vst [vmem:[#allocation12 + $0x8] sm:$0xff] %v636_v2 }
 0x1c2   :  { %v608_v5 = vpop.f32.mrb[4].mxu0 }
 0x1c3   :  { %v617_v17 = vadd.f32 %v608_v5, %v499_v14  ;;  %v610_v28 = vpop.f32.mrb[5].mxu0 }
 0x1c5   :  { %v635_v30 = vadd.f32 %v633_v53, %v617_v17 }
 0x1c7   :  { %637 = vst [vmem:[#allocation12] sm:$0xff] %v635_v30 }
 0x1c8   :  { %863 = shalt.err (!%p860_p3)
}
 0x1c9   :  { %s864_s17 = scalar_lea.hbm %s1182_s4, 256 }
 0x1ca   :  { %p865_p4 = scmp.ne.s32.totalorder %s1182_s4, %s864_s17  ;;  %p868_p5 = scmp.lt.u32.totalorder %s864_s17, %s1182_s4 }
 0x1cc   :  { %p870_p6 = pnand %p868_p5, %p865_p4 }
 0x1ce   :  { %873 = shalt.err (!%p870_p6)
}
 0x1cf   :  { %650 = dma.vmem_to_hbm [thread:$0]  %s645_s14, 256, %s1182_s4, [#allocation6], %s884_s27, %s884_s27, %s885_s28  }
 0x1d0   :  { %880 = dma.done.wait [#allocation6], 256  }
 0x1d1   :  { %881 = vsyncadd [#allocation6], 4294967040 }
 0x1d2   :  { %654 = vsyncpa [#allocation5], 1 }
 0x1d3   :  { %655 = vsyncpa [#allocation10], 1 }
 0x1d4   :  { %656 = vsyncpa [#allocation6], 1 }
 0x1d5   :  { %657 = vsyncpa [#allocation7], 1 }

</bundles_post_ra>
